<compile_context>
chip_gen: v6e
topology: v6e:2x2x1
jax: 0.10.0
libtpu: 0.0.40
codegen_flags: <defaults>
</compile_context>

<pallas_src>
import jax
import jax.numpy as jnp
from jax.experimental import pallas as pl
from jax.experimental.pallas import tpu as pltpu

EPS = 1e-5


def model_kernel(x_ref, w_ref, b_ref, g_ref, beta_ref, out_ref):
    # x_ref:    (1,1,4,4) f32 VMEM  -- full input block (N=C=1 squeezed in-kernel)
    # w_ref:    (2,9)     f32 SMEM  -- conv weights, [oc, kh*3+kw]
    # b_ref:    (2,)      f32 SMEM  -- conv bias
    # g_ref:    (1,)      f32 SMEM  -- BN gamma
    # beta_ref: (1,)      f32 SMEM  -- BN beta
    # out_ref:  (4,2)     f32 VMEM  -- fused conv+bn output; row-major order equals the
    #                                  PyTorch .view flatten order of the (1,2,2,2) conv out
    x = x_ref[0, 0]  # (4, 4) zero-cost view of the single input plane

    # ---- 9 shifted 2x2 windows, computed once, reused for both output channels ----
    wins = [x[kh:kh + 2, kw:kw + 2] for kh in range(3) for kw in range(3)]

    # ---- direct 3x3 valid conv, 2 output channels (VPU, fully unrolled) ----
    acc0 = jnp.zeros((2, 2), jnp.float32)
    acc1 = jnp.zeros((2, 2), jnp.float32)
    for k, win in enumerate(wins):
        acc0 = acc0 + w_ref[0, k] * win        # scalar SMEM weight x shifted window
        acc1 = acc1 + w_ref[1, k] * win
    acc0 = acc0 + b_ref[0]                     # conv bias, channel 0
    acc1 = acc1 + b_ref[1]                     # conv bias, channel 1

    # ---- BatchNorm over the flattened (1,1,8) view: single feature, batch stats ----
    # One-pass statistics computed on the per-channel accumulators (before the concat),
    # biased variance (training mode), clamped at 0 before rsqrt.
    n = 8.0
    s = jnp.sum(acc0) + jnp.sum(acc1)
    ss = jnp.sum(acc0 * acc0) + jnp.sum(acc1 * acc1)
    mean = s / n
    var = jnp.maximum(ss / n - mean * mean, 0.0)
    inv = jax.lax.rsqrt(var + EPS)

    # Stack channels along sublanes -> (4,2); row-major == flatten(oc, oh, ow).
    y = jnp.concatenate([acc0, acc1], axis=0)

    # Single fused normalize + affine, single full-ref store.
    out_ref[...] = (y - mean) * (inv * g_ref[0]) + beta_ref[0]


@jax.jit
def model_forward(x1, conv_w, conv_b, bn_gamma, bn_beta):
    # x1: (1,1,4,4) f32, conv_w: (2,1,3,3), conv_b: (2,), bn_gamma/bn_beta: (1,)
    w2d = conv_w.reshape(2, 9).astype(jnp.float32)   # contiguous bitcast under jit

    y = pl.pallas_call(
        model_kernel,
        out_shape=jax.ShapeDtypeStruct((4, 2), jnp.float32),
        in_specs=[
            pl.BlockSpec(memory_space=pltpu.MemorySpace.VMEM),   # x1 (1,1,4,4)
            pl.BlockSpec(memory_space=pltpu.MemorySpace.SMEM),   # conv_w (2,9)
            pl.BlockSpec(memory_space=pltpu.MemorySpace.SMEM),   # conv_b (2,)
            pl.BlockSpec(memory_space=pltpu.MemorySpace.SMEM),   # gamma (1,)
            pl.BlockSpec(memory_space=pltpu.MemorySpace.SMEM),   # beta (1,)
        ],
        out_specs=pl.BlockSpec(memory_space=pltpu.MemorySpace.VMEM),
    )(x1.astype(jnp.float32), w2d, conv_b.astype(jnp.float32),
      bn_gamma.astype(jnp.float32), bn_beta.astype(jnp.float32))

    # v2 = view(1,1,8); v4 = bn(v2); v5 = v4.permute(0,2,1) -> (1,8,1)  (pure layout,
    # free reshape inside the same jit).
    return y.reshape(1, 8, 1)


def reference_forward(x1, conv_w, conv_b, bn_gamma, bn_beta):
    # Pure-JAX reference with identical (adjusted) semantics, for correctness check only.
    v1 = jax.lax.conv_general_dilated(
        x1, conv_w, window_strides=(1, 1), padding="VALID",
        dimension_numbers=("NCHW", "OIHW", "NCHW"),
    ) + conv_b[None, :, None, None]
    v2 = v1.reshape(1, 1, 8)
    mean = jnp.mean(v2, axis=(0, 2), keepdims=True)
    var = jnp.mean((v2 - mean) ** 2, axis=(0, 2), keepdims=True)
    v4 = (v2 - mean) / jnp.sqrt(var + EPS) * bn_gamma[None, :, None] + bn_beta[None, :, None]
    return jnp.transpose(v4, (0, 2, 1))


if __name__ == "__main__":
    key = jax.random.PRNGKey(0)
    kx, kw, kb = jax.random.split(key, 3)

    x1 = jax.random.normal(kx, (1, 1, 4, 4), dtype=jnp.float32)

    # Deterministic Conv2d(1, 2, 3) init (PyTorch-style uniform bound).
    fan_in = 1 * 3 * 3
    bound = 1.0 / (fan_in ** 0.5)
    conv_w = jax.random.uniform(kw, (2, 1, 3, 3), jnp.float32, -bound, bound)
    conv_b = jax.random.uniform(kb, (2,), jnp.float32, -bound, bound)

    # BatchNorm2d(1) default init: weight=1, bias=0.
    bn_gamma = jnp.ones((1,), jnp.float32)
    bn_beta = jnp.zeros((1,), jnp.float32)

    out = model_forward(x1, conv_w, conv_b, bn_gamma, bn_beta)
    jax.block_until_ready(out)

    ref = reference_forward(x1, conv_w, conv_b, bn_gamma, bn_beta)
    assert out.shape == (1, 8, 1), out.shape
    assert jnp.allclose(out, ref, rtol=1e-4, atol=1e-5), (out, ref)

    print("KERNEL_OK")
</pallas_src>

<mosaic_0001>
module attributes {stable_mosaic.version = 11 : i64} {
  func.func @model_kernel(%arg0: memref<1x1x4x4xf32, #tpu.memory_space<vmem>>, %arg1: memref<2x9xf32, #tpu.memory_space<smem>>, %arg2: memref<2xf32, #tpu.memory_space<smem>>, %arg3: memref<1xf32, #tpu.memory_space<smem>>, %arg4: memref<1xf32, #tpu.memory_space<smem>>, %arg5: memref<4x2xf32, #tpu.memory_space<vmem>>) attributes {dimension_semantics = [], scalar_prefetch = 0 : i64, scratch_operands = 0 : i64, tpu.core_type = #tpu.core_type<tc>} {
    %c0 = arith.constant 0 : index
    %c0_0 = arith.constant 0 : index
    %c0_1 = arith.constant 0 : index
    %c0_2 = arith.constant 0 : index
    %0 = vector.load %arg0[%c0, %c0_0, %c0_1, %c0_2] : memref<1x1x4x4xf32, #tpu.memory_space<vmem>>, vector<1x1x4x4xf32>
    %1 = vector.shape_cast %0 : vector<1x1x4x4xf32> to vector<4x4xf32>
    %2 = vector.extract_strided_slice %1 {offsets = [0, 0], sizes = [2, 2], strides = [1, 1]} : vector<4x4xf32> to vector<2x2xf32>
    %3 = vector.extract_strided_slice %1 {offsets = [0, 1], sizes = [2, 2], strides = [1, 1]} : vector<4x4xf32> to vector<2x2xf32>
    %4 = vector.extract_strided_slice %1 {offsets = [0, 2], sizes = [2, 2], strides = [1, 1]} : vector<4x4xf32> to vector<2x2xf32>
    %5 = vector.extract_strided_slice %1 {offsets = [1, 0], sizes = [2, 2], strides = [1, 1]} : vector<4x4xf32> to vector<2x2xf32>
    %6 = vector.extract_strided_slice %1 {offsets = [1, 1], sizes = [2, 2], strides = [1, 1]} : vector<4x4xf32> to vector<2x2xf32>
    %7 = vector.extract_strided_slice %1 {offsets = [1, 2], sizes = [2, 2], strides = [1, 1]} : vector<4x4xf32> to vector<2x2xf32>
    %8 = vector.extract_strided_slice %1 {offsets = [2, 0], sizes = [2, 2], strides = [1, 1]} : vector<4x4xf32> to vector<2x2xf32>
    %9 = vector.extract_strided_slice %1 {offsets = [2, 1], sizes = [2, 2], strides = [1, 1]} : vector<4x4xf32> to vector<2x2xf32>
    %10 = vector.extract_strided_slice %1 {offsets = [2, 2], sizes = [2, 2], strides = [1, 1]} : vector<4x4xf32> to vector<2x2xf32>
    %cst = arith.constant 0.000000e+00 : f32
    %11 = vector.broadcast %cst : f32 to vector<2x2xf32>
    %cst_3 = arith.constant 0.000000e+00 : f32
    %12 = vector.broadcast %cst_3 : f32 to vector<2x2xf32>
    %c0_4 = arith.constant 0 : index
    %c0_5 = arith.constant 0 : index
    %13 = memref.load %arg1[%c0_4, %c0_5] : memref<2x9xf32, #tpu.memory_space<smem>>
    %14 = vector.broadcast %13 : f32 to vector<2x2xf32>
    %15 = arith.mulf %14, %2 : vector<2x2xf32>
    %16 = arith.addf %11, %15 : vector<2x2xf32>
    %c1 = arith.constant 1 : index
    %c0_6 = arith.constant 0 : index
    %17 = memref.load %arg1[%c1, %c0_6] : memref<2x9xf32, #tpu.memory_space<smem>>
    %18 = vector.broadcast %17 : f32 to vector<2x2xf32>
    %19 = arith.mulf %18, %2 : vector<2x2xf32>
    %20 = arith.addf %12, %19 : vector<2x2xf32>
    %c0_7 = arith.constant 0 : index
    %c1_8 = arith.constant 1 : index
    %21 = memref.load %arg1[%c0_7, %c1_8] : memref<2x9xf32, #tpu.memory_space<smem>>
    %22 = vector.broadcast %21 : f32 to vector<2x2xf32>
    %23 = arith.mulf %22, %3 : vector<2x2xf32>
    %24 = arith.addf %16, %23 : vector<2x2xf32>
    %c1_9 = arith.constant 1 : index
    %c1_10 = arith.constant 1 : index
    %25 = memref.load %arg1[%c1_9, %c1_10] : memref<2x9xf32, #tpu.memory_space<smem>>
    %26 = vector.broadcast %25 : f32 to vector<2x2xf32>
    %27 = arith.mulf %26, %3 : vector<2x2xf32>
    %28 = arith.addf %20, %27 : vector<2x2xf32>
    %c0_11 = arith.constant 0 : index
    %c2 = arith.constant 2 : index
    %29 = memref.load %arg1[%c0_11, %c2] : memref<2x9xf32, #tpu.memory_space<smem>>
    %30 = vector.broadcast %29 : f32 to vector<2x2xf32>
    %31 = arith.mulf %30, %4 : vector<2x2xf32>
    %32 = arith.addf %24, %31 : vector<2x2xf32>
    %c1_12 = arith.constant 1 : index
    %c2_13 = arith.constant 2 : index
    %33 = memref.load %arg1[%c1_12, %c2_13] : memref<2x9xf32, #tpu.memory_space<smem>>
    %34 = vector.broadcast %33 : f32 to vector<2x2xf32>
    %35 = arith.mulf %34, %4 : vector<2x2xf32>
    %36 = arith.addf %28, %35 : vector<2x2xf32>
    %c0_14 = arith.constant 0 : index
    %c3 = arith.constant 3 : index
    %37 = memref.load %arg1[%c0_14, %c3] : memref<2x9xf32, #tpu.memory_space<smem>>
    %38 = vector.broadcast %37 : f32 to vector<2x2xf32>
    %39 = arith.mulf %38, %5 : vector<2x2xf32>
    %40 = arith.addf %32, %39 : vector<2x2xf32>
    %c1_15 = arith.constant 1 : index
    %c3_16 = arith.constant 3 : index
    %41 = memref.load %arg1[%c1_15, %c3_16] : memref<2x9xf32, #tpu.memory_space<smem>>
    %42 = vector.broadcast %41 : f32 to vector<2x2xf32>
    %43 = arith.mulf %42, %5 : vector<2x2xf32>
    %44 = arith.addf %36, %43 : vector<2x2xf32>
    %c0_17 = arith.constant 0 : index
    %c4 = arith.constant 4 : index
    %45 = memref.load %arg1[%c0_17, %c4] : memref<2x9xf32, #tpu.memory_space<smem>>
    %46 = vector.broadcast %45 : f32 to vector<2x2xf32>
    %47 = arith.mulf %46, %6 : vector<2x2xf32>
    %48 = arith.addf %40, %47 : vector<2x2xf32>
    %c1_18 = arith.constant 1 : index
    %c4_19 = arith.constant 4 : index
    %49 = memref.load %arg1[%c1_18, %c4_19] : memref<2x9xf32, #tpu.memory_space<smem>>
    %50 = vector.broadcast %49 : f32 to vector<2x2xf32>
    %51 = arith.mulf %50, %6 : vector<2x2xf32>
    %52 = arith.addf %44, %51 : vector<2x2xf32>
    %c0_20 = arith.constant 0 : index
    %c5 = arith.constant 5 : index
    %53 = memref.load %arg1[%c0_20, %c5] : memref<2x9xf32, #tpu.memory_space<smem>>
    %54 = vector.broadcast %53 : f32 to vector<2x2xf32>
    %55 = arith.mulf %54, %7 : vector<2x2xf32>
    %56 = arith.addf %48, %55 : vector<2x2xf32>
    %c1_21 = arith.constant 1 : index
    %c5_22 = arith.constant 5 : index
    %57 = memref.load %arg1[%c1_21, %c5_22] : memref<2x9xf32, #tpu.memory_space<smem>>
    %58 = vector.broadcast %57 : f32 to vector<2x2xf32>
    %59 = arith.mulf %58, %7 : vector<2x2xf32>
    %60 = arith.addf %52, %59 : vector<2x2xf32>
    %c0_23 = arith.constant 0 : index
    %c6 = arith.constant 6 : index
    %61 = memref.load %arg1[%c0_23, %c6] : memref<2x9xf32, #tpu.memory_space<smem>>
    %62 = vector.broadcast %61 : f32 to vector<2x2xf32>
    %63 = arith.mulf %62, %8 : vector<2x2xf32>
    %64 = arith.addf %56, %63 : vector<2x2xf32>
    %c1_24 = arith.constant 1 : index
    %c6_25 = arith.constant 6 : index
    %65 = memref.load %arg1[%c1_24, %c6_25] : memref<2x9xf32, #tpu.memory_space<smem>>
    %66 = vector.broadcast %65 : f32 to vector<2x2xf32>
    %67 = arith.mulf %66, %8 : vector<2x2xf32>
    %68 = arith.addf %60, %67 : vector<2x2xf32>
    %c0_26 = arith.constant 0 : index
    %c7 = arith.constant 7 : index
    %69 = memref.load %arg1[%c0_26, %c7] : memref<2x9xf32, #tpu.memory_space<smem>>
    %70 = vector.broadcast %69 : f32 to vector<2x2xf32>
    %71 = arith.mulf %70, %9 : vector<2x2xf32>
    %72 = arith.addf %64, %71 : vector<2x2xf32>
    %c1_27 = arith.constant 1 : index
    %c7_28 = arith.constant 7 : index
    %73 = memref.load %arg1[%c1_27, %c7_28] : memref<2x9xf32, #tpu.memory_space<smem>>
    %74 = vector.broadcast %73 : f32 to vector<2x2xf32>
    %75 = arith.mulf %74, %9 : vector<2x2xf32>
    %76 = arith.addf %68, %75 : vector<2x2xf32>
    %c0_29 = arith.constant 0 : index
    %c8 = arith.constant 8 : index
    %77 = memref.load %arg1[%c0_29, %c8] : memref<2x9xf32, #tpu.memory_space<smem>>
    %78 = vector.broadcast %77 : f32 to vector<2x2xf32>
    %79 = arith.mulf %78, %10 : vector<2x2xf32>
    %80 = arith.addf %72, %79 : vector<2x2xf32>
    %c1_30 = arith.constant 1 : index
    %c8_31 = arith.constant 8 : index
    %81 = memref.load %arg1[%c1_30, %c8_31] : memref<2x9xf32, #tpu.memory_space<smem>>
    %82 = vector.broadcast %81 : f32 to vector<2x2xf32>
    %83 = arith.mulf %82, %10 : vector<2x2xf32>
    %84 = arith.addf %76, %83 : vector<2x2xf32>
    %c0_32 = arith.constant 0 : index
    %85 = memref.load %arg2[%c0_32] : memref<2xf32, #tpu.memory_space<smem>>
    %86 = vector.broadcast %85 : f32 to vector<2x2xf32>
    %87 = arith.addf %80, %86 : vector<2x2xf32>
    %c1_33 = arith.constant 1 : index
    %88 = memref.load %arg2[%c1_33] : memref<2xf32, #tpu.memory_space<smem>>
    %89 = vector.broadcast %88 : f32 to vector<2x2xf32>
    %90 = arith.addf %84, %89 : vector<2x2xf32>
    %91 = vector.shape_cast %87 : vector<2x2xf32> to vector<1x2x2xf32>
    %cst_34 = arith.constant dense<0.000000e+00> : vector<1xf32>
    %92 = vector.multi_reduction <add>, %91, %cst_34 [1, 2] : vector<1x2x2xf32> to vector<1xf32>
    %93 = vector.shape_cast %92 : vector<1xf32> to vector<1x1x1xf32>
    %94 = vector.extract %93[0, 0, 0] : f32 from vector<1x1x1xf32>
    %95 = vector.shape_cast %90 : vector<2x2xf32> to vector<1x2x2xf32>
    %cst_35 = arith.constant dense<0.000000e+00> : vector<1xf32>
    %96 = vector.multi_reduction <add>, %95, %cst_35 [1, 2] : vector<1x2x2xf32> to vector<1xf32>
    %97 = vector.shape_cast %96 : vector<1xf32> to vector<1x1x1xf32>
    %98 = vector.extract %97[0, 0, 0] : f32 from vector<1x1x1xf32>
    %99 = arith.addf %94, %98 : f32
    %100 = arith.mulf %87, %87 : vector<2x2xf32>
    %101 = vector.shape_cast %100 : vector<2x2xf32> to vector<1x2x2xf32>
    %cst_36 = arith.constant dense<0.000000e+00> : vector<1xf32>
    %102 = vector.multi_reduction <add>, %101, %cst_36 [1, 2] : vector<1x2x2xf32> to vector<1xf32>
    %103 = vector.shape_cast %102 : vector<1xf32> to vector<1x1x1xf32>
    %104 = vector.extract %103[0, 0, 0] : f32 from vector<1x1x1xf32>
    %105 = arith.mulf %90, %90 : vector<2x2xf32>
    %106 = vector.shape_cast %105 : vector<2x2xf32> to vector<1x2x2xf32>
    %cst_37 = arith.constant dense<0.000000e+00> : vector<1xf32>
    %107 = vector.multi_reduction <add>, %106, %cst_37 [1, 2] : vector<1x2x2xf32> to vector<1xf32>
    %108 = vector.shape_cast %107 : vector<1xf32> to vector<1x1x1xf32>
    %109 = vector.extract %108[0, 0, 0] : f32 from vector<1x1x1xf32>
    %110 = arith.addf %104, %109 : f32
    %cst_38 = arith.constant 8.000000e+00 : f32
    %111 = arith.divf %99, %cst_38 : f32
    %cst_39 = arith.constant 8.000000e+00 : f32
    %112 = arith.divf %110, %cst_39 : f32
    %113 = arith.mulf %111, %111 : f32
    %114 = arith.subf %112, %113 : f32
    %cst_40 = arith.constant 0.000000e+00 : f32
    %115 = arith.maximumf %114, %cst_40 : f32
    %cst_41 = arith.constant 9.99999974E-6 : f32
    %116 = arith.addf %115, %cst_41 : f32
    %117 = math.rsqrt %116 : f32
    %118 = tpu.concatenate %87, %90 in 0 : vector<2x2xf32>, vector<2x2xf32> -> vector<4x2xf32>
    %119 = vector.broadcast %111 : f32 to vector<4x2xf32>
    %120 = arith.subf %118, %119 : vector<4x2xf32>
    %c0_42 = arith.constant 0 : index
    %121 = memref.load %arg3[%c0_42] : memref<1xf32, #tpu.memory_space<smem>>
    %122 = arith.mulf %117, %121 : f32
    %123 = vector.broadcast %122 : f32 to vector<4x2xf32>
    %124 = arith.mulf %120, %123 : vector<4x2xf32>
    %c0_43 = arith.constant 0 : index
    %125 = memref.load %arg4[%c0_43] : memref<1xf32, #tpu.memory_space<smem>>
    %126 = vector.broadcast %125 : f32 to vector<4x2xf32>
    %127 = arith.addf %124, %126 : vector<4x2xf32>
    %c0_44 = arith.constant 0 : index
    %c0_45 = arith.constant 0 : index
    %128 = vector.load %arg5[%c0_44, %c0_45] : memref<4x2xf32, #tpu.memory_space<vmem>>, vector<4x2xf32>
    tpu.vector_store %arg5[%c0_44, %c0_45], %127 {strides = array<i32>} : memref<4x2xf32, #tpu.memory_space<vmem>>, vector<4x2xf32>,
    return
  }
}

</mosaic_0001>

<bundles_post_ra>
// kernel: model_forward.1
= control target key start
LH: loop header
LB: loop body
LE: loop exit
PB: predicated region body
PF: predicated region fallthrough
CT: control target
= control target key end

     0   :  { %12 = vsyncpa [#allocation5], 0  ;;  %s422_s0 = inlined_call_operand.vmem [shape: f32[1,1,4,4], index: 0, kind: input, shape index: {}]   ;;  %s423_s1 = inlined_call_operand.vmem [shape: f32[2,9], index: 1, kind: input, shape index: {}]   ;;  %s424_s2 = inlined_call_operand.vmem [shape: f32[2], index: 2, kind: input, shape index: {}]   ;;  %s425_s3 = inlined_call_operand.<no memory space> [shape: f32[1], index: 3, kind: input, shape index: {}]   ;;  %s426_s4 = inlined_call_operand.<no memory space> [shape: f32[1], index: 4, kind: input, shape index: {}]   ;;  %s427_s5 = inlined_call_operand.vmem [shape: f32[4,2], index: 5, kind: output, shape index: {}]  }
   0x1   :  { %s22_s20 = sshll.u32 %s423_s1, 4  ;;  %s23_s20 = int_to_ptr.vmem [resolvable:$true] %s22_s20 }
   0x2   :  { %13 = vsyncpa [#allocation7], 0  ;;  %s32_s23 = sshll.u32 %s424_s2, 4  ;;  %s309_s24 = scalar_lea.vmem %s23_s20, 32  ;;  %s33_s23 = int_to_ptr.vmem [resolvable:$true] %s32_s23 }
   0x3   :  { %p310_p0 = scmp.ne.s32.totalorder %s23_s20, %s309_s24  ;;  %p314_p1 = scmp.lt.s32.totalorder %s23_s20, %s23_s20 }
   0x4   :  { %p315_p2 = scmp.lt.s32.totalorder %s309_s24, %s309_s24 }
   0x6   :  { %p316_p3 = por %p315_p2, %p314_p1 }
   0x8   :  { %p317_p4 = pnand %p316_p3, %p310_p0 }
   0xa   :  { %320 = shalt.err (!%p317_p4)
}
   0xb   :  { %s337_s25 = smov [#allocation4]   ;;  %s321_s26 = scalar_lea.vmem %s33_s23, 16 }
   0xc   :  { %25 = dma.vmem_to_smem %s23_s20, 32, %s337_s25, [#allocation5]  }
   0xd   :  { %p322_p5 = scmp.ne.s32.totalorder %s33_s23, %s321_s26  ;;  %p326_p6 = scmp.lt.s32.totalorder %s33_s23, %s33_s23 }
   0xe   :  { %p327_p7 = scmp.lt.s32.totalorder %s321_s26, %s321_s26 }
  0x10   :  { %p328_p8 = por %p327_p7, %p326_p6 }
  0x12   :  { %p329_p9 = pnand %p328_p8, %p322_p5 }
  0x14   :  { %332 = shalt.err (!%p329_p9)
}
  0x15   :  { %s338_s1 = smov [#allocation6]  }
  0x16   :  { %35 = dma.vmem_to_smem %s33_s23, 16, %s338_s1, [#allocation7]  }
  0x17   :  { %333 = dma.done.wait [#allocation5], 32  }
  0x18   :  { %334 = vsyncadd [#allocation5], 4294967264 }
  0x19   :  { %335 = dma.done.wait [#allocation7], 16  }
  0x1a   :  { %336 = vsyncadd [#allocation7], 4294967280 }
  0x1b   :  { %46 = sfence }
  0x1c   :  { %s277_s2 = sld [smem:[#allocation4 + $0x2]]  ;;  %v381_v0 = vld [vmem:[%s422_s0] sm:$0xf]  ;;  %s339_s12 = smov 126   ;;  %vm194_vm0 = vcmask 9216   ;;  %vm255_vm1 = vcmask 1041408  }
  0x1d   :  { %s275_s27 = sld [smem:[#allocation4 + $0x1]]  ;;  %s340_s13 = smov 127   ;;  %vm266_vm2 = vcmask 11264  }
  0x1e   :  { %s278_s28 = sld [smem:[#allocation4 + $0x82]] }
  0x1f   :  { %s276_s29 = sld [smem:[#allocation4 + $0x81]] }
  0x20   :  { %s282_s7 = sld [smem:[#allocation4 + $0x84]] }
  0x21   :  { %s281_s8 = sld [smem:[#allocation4 + $0x4]] }
  0x22   :  { %v73_v1 = vstv %s277_s2  ;;  %s284_s9 = sld [smem:[#allocation4 + $0x85]] }
  0x23   :  { %v74_v2 = vmul.f32 %v73_v1, %v381_v0  ;;  %v57_v3 = vstv %s275_s27  ;;  %s283_s10 = sld [smem:[#allocation4 + $0x5]] }
  0x24   :  { %v58_v4 = vmul.f32 %v57_v3, %v381_v0  ;;  %v81_v5 = vstv %s278_s28  ;;  %s288_s11 = sld [smem:[#allocation4 + $0x87]] }
  0x25   :  { %76 = vrot.lane.b32.xlu1 %v74_v2, %s339_s12  ;;  %v82_v6 = vmul.f32 %v81_v5, %v381_v0  ;;  %v65_v7 = vstv %s276_s29  ;;  %s287_s0 = sld [smem:[#allocation4 + $0x7]] }
  0x26   :  { %60 = vrot.lane.b32.xlu0 %v58_v4, %s340_s13  ;;  %v66_v8 = vmul.f32 %v65_v7, %v381_v0  ;;  %v112_v9 = vstv %s282_s7  ;;  %s290_s14 = sld [smem:[#allocation4 + $0x88]]  ;;  %s341_s7 = smov 0.0  }
  0x27   :  { %v113_v10 = vmul.f32 %v112_v9, %v381_v0  ;;  %v103_v11 = vstv %s281_s8  ;;  %s289_s15 = sld [smem:[#allocation4 + $0x8]] }
  0x28   :  { %v104_v12 = vmul.f32 %v103_v11, %v381_v0  ;;  %v130_v13 = vstv %s284_s9  ;;  %s48_s16 = sld [smem:[#allocation4]] }
  0x29   :  { %84 = vrot.lane.b32.xlu1 %v82_v6, %s339_s12  ;;  %v115_v14 = vrot.slane %v113_v10, 1  ;;  %v131_v15 = vmul.f32 %v130_v13, %v381_v0  ;;  %v121_v16 = vstv %s283_s10  ;;  %s274_s17 = sld [smem:[#allocation4 + $0x80]] }
  0x2a   :  { %68 = vrot.lane.b32.xlu0 %v66_v8, %s340_s13  ;;  %v106_v17 = vrot.slane %v104_v12, 1  ;;  %v122_v18 = vmul.f32 %v121_v16, %v381_v0  ;;  %v162_v19 = vstv %s288_s11  ;;  %s280_s18 = sld [smem:[#allocation4 + $0x83]] }
  0x2b   :  { %v153_v20 = vstv %s287_s0  ;;  %v133_v21 = vrot.slane %v131_v15, 1  ;;  %v163_v22 = vmul.f32 %v162_v19, %v381_v0  ;;  %s279_s19 = sld [smem:[#allocation4 + $0x3]] }
  0x2c   :  { %v124_v23 = vrot.slane %v122_v18, 1  ;;  %v154_v24 = vmul.f32 %v153_v20, %v381_v0  ;;  %v180_v25 = vstv %s290_s14  ;;  %s286_s20 = sld [smem:[#allocation4 + $0x86]] }
  0x2d   :  { %116 = vrot.lane.b32.xlu1 %v115_v14, %s340_s13  ;;  %v171_v26 = vstv %s289_s15  ;;  %v165_v27 = vrot.slane %v163_v22, 2  ;;  %v181_v28 = vmul.f32 %v180_v25, %v381_v0  ;;  %s285_s21 = sld [smem:[#allocation4 + $0x6]] }
  0x2e   :  { %107 = vrot.lane.b32.xlu0 %v106_v17, %s340_s13  ;;  %v156_v29 = vrot.slane %v154_v24, 2  ;;  %v172_v30 = vmul.f32 %v171_v26, %v381_v0  ;;  %v49_v33 = vstv %s48_s16  ;;  %s291_s22 = sld [smem:[#allocation6 + $0x1]] }
  0x2f   :  { %v183_v31 = vrot.slane %v181_v28, 2  ;;  %v50_v34 = vmul.f32 %v49_v33, %v381_v0  ;;  %v53_v35 = vstv %s274_s17  ;;  %s188_s23 = sld [smem:[#allocation6]] }
  0x30   :  { %v174_v32 = vrot.slane %v172_v30, 2  ;;  %v96_v36 = vstv %s280_s18  ;;  %v54_v41 = vmul.f32 %v53_v35, %v381_v0 }
  0x31   :  { %134 = vrot.lane.b32.xlu1 %v133_v21, %s339_s12  ;;  %v89_v37 = vstv %s279_s19  ;;  %v97_v42 = vmul.f32 %v96_v36, %v381_v0 }
  0x32   :  { %125 = vrot.lane.b32.xlu0 %v124_v23, %s339_s12  ;;  %v90_v43 = vmul.f32 %v89_v37, %v381_v0  ;;  %v146_v46 = vstv %s286_s20 }
  0x33   :  { %v139_v47 = vstv %s285_s21  ;;  %v99_v50 = vrot.slane %v97_v42, 1  ;;  %v147_v54 = vmul.f32 %v146_v46, %v381_v0 }
  0x34   :  { %v92_v51 = vrot.slane %v90_v43, 1  ;;  %v140_v55 = vmul.f32 %v139_v47, %v381_v0  ;;  %v192_v0 = vstv %s291_s22 }
  0x35   :  { %166 = vrot.lane.b32.xlu1 %v165_v27, %s340_s13  ;;  %v149_v62 = vrot.slane %v147_v54, 2  ;;  %v189_v12 = vstv %s188_s23 }
  0x36   :  { %157 = vrot.lane.b32.xlu0 %v156_v29, %s340_s13  ;;  %v142_v63 = vrot.slane %v140_v55, 2 }
  0x39   :  { %184 = vrot.lane.b32.xlu1 %v183_v31, %s339_s12 }
  0x3a   :  { %175 = vrot.lane.b32.xlu0 %v174_v32, %s339_s12 }
  0x97   :  { %v77_v38 = vpop.permute.xlu1 %76 }
  0x98   :  { %v61_v39 = vpop.permute.xlu0 %60 }
  0x99   :  { %v63_v40 = vadd.f32 %v61_v39, %v50_v34 }
  0x9b   :  { %v85_v44 = vpop.permute.xlu1 %84  ;;  %v79_v48 = vadd.f32 %v77_v38, %v63_v40 }
  0x9c   :  { %v69_v45 = vpop.permute.xlu0 %68 }
  0x9d   :  { %v71_v49 = vadd.f32 %v69_v45, %v54_v41  ;;  %v94_v58 = vadd.f32 %v92_v51, %v79_v48 }
  0x9f   :  { %v87_v52 = vadd.f32 %v85_v44, %v71_v49  ;;  %v117_v53 = vpop.permute.xlu1 %116 }
  0xa0   :  { %v108_v56 = vpop.permute.xlu0 %107 }
  0xa1   :  { %v101_v57 = vadd.f32 %v99_v50, %v87_v52  ;;  %v110_v60 = vadd.f32 %v108_v56, %v94_v58  ;;  %v264_v58 = vstv %s426_s4 }
  0xa3   :  { %v119_v59 = vadd.f32 %v117_v53, %v101_v57  ;;  %v135_v61 = vpop.permute.xlu1 %134 }
  0xa4   :  { %v126_v1 = vpop.permute.xlu0 %125 }
  0xa5   :  { %v137_v2 = vadd.f32 %v135_v61, %v119_v59  ;;  %v128_v3 = vadd.f32 %v126_v1, %v110_v60 }
  0xa7   :  { %v167_v4 = vpop.permute.xlu1 %166  ;;  %v151_v5 = vadd.f32 %v149_v62, %v137_v2  ;;  %v144_v6 = vadd.f32 %v142_v63, %v128_v3 }
  0xa8   :  { %v158_v7 = vpop.permute.xlu0 %157 }
  0xa9   :  { %v169_v8 = vadd.f32 %v167_v4, %v151_v5  ;;  %v160_v9 = vadd.f32 %v158_v7, %v144_v6 }
  0xab   :  { %v185_v10 = vpop.permute.xlu1 %184 }
  0xac   :  { %v187_v11 = vadd.f32 %v185_v10, %v169_v8  ;;  %v176_v13 = vpop.permute.xlu0 %175 }
  0xad   :  { %v178_v14 = vadd.f32 %v176_v13, %v160_v9 }
  0xae   :  { %v193_v15 = vadd.f32 %v192_v0, %v187_v11 }
  0xaf   :  { %v190_v16 = vadd.f32 %v189_v12, %v178_v14 }
  0xb0   :  { %v253_v17 = vrot.slane %v193_v15, 6  ;;  %v205_v18 = vsel %vm194_vm0, %v193_v15, 0.0  ;;  %v227_v23 = vmul.f32 %v193_v15, %v193_v15 }
  0xb1   :  { %206 = vadd.xlane.f32.xlu1 %v205_v18  ;;  %v195_v19 = vsel %vm194_vm0, %v190_v16, 0.0  ;;  %v216_v20 = vmul.f32 %v190_v16, %v190_v16 }
  0xb2   :  { %196 = vadd.xlane.f32.xlu0 %v195_v19  ;;  %v256_v21 = vsel %vm255_vm1, %v190_v16, %v253_v17  ;;  %v228_v24 = vsel %vm194_vm0, %v227_v23, 0.0 }
  0xb3   :  { %v217_v22 = vsel %vm194_vm0, %v216_v20, 0.0 }
  0xb6   :  { %218 = vadd.xlane.f32.xlu0 %v217_v22 }
  0xba   :  { %229 = vadd.xlane.f32.xlu0 %v228_v24 }
 0x13a   :  { %v207_v25 = vpop.xlane.xlu1 %206 }
 0x13b   :  { %v208_v26 = vrot.slane %v207_v25, 4  ;;  %v197_v27 = vpop.xlane.xlu0 %196 }
 0x13c   :  { %v198_v28 = vrot.slane %v197_v27, 4 }
 0x13d   :  { %v209_v29 = vadd.f32 %v208_v26, %v207_v25 }
 0x13e   :  { %v199_v30 = vadd.f32 %v198_v28, %v197_v27 }
 0x13f   :  { %v210_v31 = vrot.slane %v209_v29, 2  ;;  %v219_v32 = vpop.xlane.xlu0 %218 }
 0x140   :  { %v200_v33 = vrot.slane %v199_v30, 2  ;;  %v220_v34 = vrot.slane %v219_v32, 4 }
 0x141   :  { %v211_v35 = vadd.f32 %v210_v31, %v209_v29 }
 0x142   :  { %v221_v36 = vadd.f32 %v220_v34, %v219_v32  ;;  %v201_v37 = vadd.f32 %v200_v33, %v199_v30 }
 0x143   :  { %v230_v38 = vpop.xlane.xlu0 %229  ;;  %v212_v39 = vrot.slane %v211_v35, 1 }
 0x144   :  { %v222_v40 = vrot.slane %v221_v36, 2  ;;  %v231_v41 = vrot.slane %v230_v38, 4  ;;  %v202_v42 = vrot.slane %v201_v37, 1 }
 0x145   :  { %v213_v43 = vadd.f32 %v212_v39, %v211_v35 }
 0x146   :  { %v232_v44 = vadd.f32 %v231_v41, %v230_v38  ;;  %v203_v45 = vadd.f32 %v202_v42, %v201_v37  ;;  %v223_v46 = vadd.f32 %v222_v40, %v221_v36 }
 0x148   :  { %v233_v47 = vrot.slane %v232_v44, 2  ;;  %292 = vpush %v203_v45  ;;  %v224_v48 = vrot.slane %v223_v46, 1 }
 0x149   :  { %294 = vpush %v213_v43 }
 0x14a   :  { %v234_v49 = vadd.f32 %v233_v47, %v232_v44  ;;  %v225_v50 = vadd.f32 %v224_v48, %v223_v46 }
 0x14c   :  { %296 = vpush %v225_v50  ;;  %v235_v51 = vrot.slane %v234_v49, 1 }
 0x14e   :  { %v236_v52 = vadd.f32 %v235_v51, %v234_v49 }
 0x150   :  { %298 = vpush %v236_v52 }
 0x179   :  { %s293_s24 = spop %292 }
 0x17a   :  { %s295_s25 = spop %294 }
 0x17b   :  { %s215_s26 = sadd.f32 %s295_s25, %s293_s24 }
 0x17d   :  { %s241_s1 = smul.f32 0.125, %s215_s26  ;;  %s297_s2 = spop %296 }
 0x17f   :  { %v257_v53 = vstv %s241_s1  ;;  %s245_s29 = smul.f32 %s241_s1, %s241_s1 }
 0x180   :  { %v258_v54 = vsub.f32 %v256_v21, %v257_v53 }
 0x181   :  { %s299_s27 = spop %298 }
 0x182   :  { %s238_s28 = sadd.f32 %s299_s27, %s297_s2 }
 0x184   :  { %s244_s30 = smul.f32 0.125, %s238_s28 }
 0x186   :  { %s246_s6 = ssub.f32 %s244_s30, %s245_s29 }
 0x188   :  { %s247_s8 = smax.f32 %s341_s7, %s246_s6 }
 0x189   :  { %s248_s9 = sadd.f32 1e-05, %s247_s8 }
 0x18b   :  { %v249_v55 = vstv %s248_s9 }
 0x18c   :  { %307 = vrsqrt.f32 %v249_v55 }
 0x199   :  { %v308_v56 = vpop.eup %307 }
 0x19a   :  { %300 = vpush %v308_v56 }
 0x1cb   :  { %s301_s10 = spop %300 }
 0x1cc   :  { %s260_s0 = smul.f32 %s301_s10, %s425_s3 }
 0x1ce   :  { %v261_v57 = vstv %s260_s0 }
 0x1cf   :  { %v262_v59 = vmul.f32 %v261_v57, %v258_v54 }
 0x1d1   :  { %v265_v60 = vadd.f32 %v264_v58, %v262_v59 }
 0x1d3   :  { %267 = vst.msk [vmem:[%s427_s5] sm:$0xf] %vm266_vm2, %v265_v60 }
 0x1d4   :  { %272 = vsyncpa [#allocation5], 1 }
 0x1d5   :  { %273 = vsyncpa [#allocation7], 1 }

</bundles_post_ra>
